<compile_context>
chip_gen: v5e
topology: v5e:2x2
jax: 0.10.0
libtpu: 0.0.40
codegen_flags: <defaults>
</compile_context>

<pallas_src>
import math

import numpy as np
import jax
import jax.numpy as jnp
from jax.experimental import pallas as pl
from jax.experimental.pallas import tpu as pltpu


# --------------------------------------------------------------------------- kernel

def _spectral_conv1d_kernel(x_ref, f_ref, w_ref, g_ref, o_ref):
    """One batch tile: forward truncated rDFT -> per-mode channel mix -> inverse rDFT.

    x_ref: (C_in, TB, N)      channel-major input tile
    f_ref: (N, 4M)            forward basis, lanes = [cos | -sin | cos | -sin]
    w_ref: (C_in*C_out, 4M)   packed weights, row i*C_out+o = [wr | -wi | wi | wr]
    g_ref: (4M, N)            inverse basis, rows = [c*cos ; c*cos ; -c*sin ; -c*sin]
    o_ref: (C_out, TB, N)     channel-major output tile
    """
    C_in, TB, N = x_ref.shape
    C_out = o_ref.shape[0]

    # ---- forward truncated rDFT: ONE MXU matmul over all C_in*TB rows (modes in lanes)
    x2 = x_ref[...].reshape(C_in * TB, N)                     # leading-dim merge (free)
    xf = jnp.dot(x2, f_ref[...], preferred_element_type=jnp.float32)   # (C_in*TB, 4M)

    # ---- per-mode complex channel mixing on the VPU (tiny next to the DFT matmuls) ----
    # channel-i slab = static TB-aligned row slice; weight row broadcast along sublanes.
    w = w_ref[...]
    slabs = [xf[i * TB:(i + 1) * TB, :] for i in range(C_in)]          # (TB, 4M) each
    mixed = []
    for o in range(C_out):
        acc = slabs[0] * w[o:o + 1, :]
        for i in range(1, C_in):
            acc = acc + slabs[i] * w[i * C_out + o:i * C_out + o + 1, :]
        mixed.append(acc)                                              # (TB, 4M)
    mixed = jnp.concatenate(mixed, axis=0)                             # (C_out*TB, 4M)

    # ---- inverse truncated rDFT: ONE MXU matmul (Re/Im folding absorbed in g_ref) ----
    y = jnp.dot(mixed, g_ref[...], preferred_element_type=jnp.float32)  # (C_out*TB, N)
    o_ref[...] = y.reshape(C_out, TB, N).astype(o_ref.dtype)


# --------------------------------------------------------------------------- tiling

def _round_up(x, m):
    return ((x + m - 1) // m) * m


def _vmem_capacity_bytes():
    """Per-core VMEM capacity; conservative (v7x) fallback if the query fails."""
    try:
        return int(pltpu.get_tpu_info().vmem_capacity_bytes)
    except Exception:
        return 64 * 1024 * 1024


def _pick_batch_tile(B, C_in, C_out, N, M, vmem_cap):
    """Batch tile TB (multiple of 8) sized from the real VMEM capacity."""
    m4 = 4 * M
    # Bytes that scale with TB: double-buffered x and out blocks plus the in-kernel
    # f32 intermediates (xf, per-o accumulators, mixed operand).
    per_tb = 4 * (2 * C_in * N + 2 * C_out * N + (C_in + 2 * C_out) * m4)
    # Grid-resident operands (single-buffered): F (N,4M), G (4M,N), packed weights.
    resident = 4 * (2 * N * m4 + C_in * C_out * m4)
    budget = int(0.45 * vmem_cap) - resident
    tb_cap = max(8, (max(budget, 0) // per_tb) // 8 * 8)

    # MXU row alignment: try to make TB*C_in and TB*C_out multiples of 256
    # (a multiple of 256 is also a multiple of v5e's 128-row MXU tile).
    quantum = math.lcm(8, 256 // math.gcd(256, C_in), 256 // math.gcd(256, C_out))

    TB = min(tb_cap, _round_up(B, 8), 4096)
    if TB >= quantum:
        TB = (TB // quantum) * quantum
    # Prefer >= 2 grid steps so both v7x TensorCores get work on the parallel batch
    # axis, provided each half-tile still feeds the MXU a reasonable number of rows.
    if TB >= B and B > 8 and (TB // 2) * min(C_in, C_out) >= 128:
        TB = max(8, _round_up((B + 1) // 2, 8))
    Bp = _round_up(B, TB)
    return TB, Bp


# --------------------------------------------------------------------------- wrapper

def _spectral_conv1d_call(xT, F, W, G, *, TB, vmem_limit, single_buffered):
    C_in, Bp, N = xT.shape
    M4 = F.shape[1]
    C_out = W.shape[0] // C_in

    def resident(shape):
        idx = lambda *_: (0,) * len(shape)
        if single_buffered:
            # Grid-invariant operand: one VMEM copy, no double-buffering.
            return pl.BlockSpec(shape, idx, pipeline_mode=pl.Buffered(1))
        return pl.BlockSpec(shape, idx)

    return pl.pallas_call(
        _spectral_conv1d_kernel,
        out_shape=jax.ShapeDtypeStruct((C_out, Bp, N), jnp.float32),
        grid_spec=pltpu.PrefetchScalarGridSpec(
            num_scalar_prefetch=0,
            grid=(Bp // TB,),
            in_specs=[
                pl.BlockSpec((C_in, TB, N), lambda b: (0, b, 0)),   # x   (batch-tiled)
                resident((N, M4)),                                  # F   (resident)
                resident((C_in * C_out, M4)),                       # W   (resident)
                resident((M4, N)),                                  # G   (resident)
            ],
            out_specs=pl.BlockSpec((C_out, TB, N), lambda b: (0, b, 0)),
        ),
        compiler_params=pltpu.CompilerParams(
            dimension_semantics=("parallel",),      # independent batch tiles
            vmem_limit_bytes=int(vmem_limit),
        ),
    )(xT, F, W, G)


def spectral_conv1d(x, weights_r, weights_i, *, batch_tile=None):
    """x: (B, C_in, N) float32; weights_{r,i}: (C_in, C_out, modes1) float32."""
    B, C_in, N = x.shape
    Ci, C_out, M = weights_r.shape
    assert Ci == C_in and 1 <= M <= N // 2 + 1

    vmem_cap = _vmem_capacity_bytes()
    if batch_tile is None:
        TB, Bp = _pick_batch_tile(B, C_in, C_out, N, M, vmem_cap)
    else:
        TB = max(8, _round_up(int(batch_tile), 8))
        Bp = _round_up(B, TB)
    vmem_limit = max(16 << 20, min(int(0.85 * vmem_cap), 100 << 20))

    # ---- host-side constants: duplicated truncated real-DFT bases ----
    n = np.arange(N)
    k = np.arange(M)
    ang = 2.0 * np.pi * np.outer(n, k) / N                               # (N, M)
    F2 = np.concatenate([np.cos(ang), -np.sin(ang)], axis=1)             # (N, 2M)
    Fbig = np.ascontiguousarray(np.concatenate([F2, F2], axis=1),
                                dtype=np.float32)                        # (N, 4M)

    c = np.where((k == 0) | ((N % 2 == 0) & (k == N // 2)), 1.0, 2.0) / N
    ang_i = 2.0 * np.pi * np.outer(k, n) / N                             # (M, N)
    Gc = c[:, None] * np.cos(ang_i)
    Gs = -(c[:, None] * np.sin(ang_i))
    Gbig = np.ascontiguousarray(np.concatenate([Gc, Gc, Gs, Gs], axis=0),
                                dtype=np.float32)                        # (4M, N)

    # ---- packed per-(i,o) weight lane-vectors: [wr | -wi | wi | wr] ----
    wr = weights_r.astype(jnp.float32)
    wi = weights_i.astype(jnp.float32)
    W4 = jnp.concatenate([wr, -wi, wi, wr], axis=-1).reshape(C_in * C_out, 4 * M)

    # ---- channel-major, batch-padded input (wrapper-side layout plumbing) ----
    xp = x.astype(jnp.float32)
    if Bp != B:
        xp = jnp.pad(xp, ((0, Bp - B), (0, 0), (0, 0)))
    xT = jnp.transpose(xp, (1, 0, 2))                                    # (C_in, Bp, N)

    try:
        outT = _spectral_conv1d_call(xT, jnp.asarray(Fbig), W4, jnp.asarray(Gbig),
                                     TB=TB, vmem_limit=vmem_limit, single_buffered=True)
    except Exception:
        # pl.Buffered(1) not supported by this jax version -> default double-buffering.
        outT = _spectral_conv1d_call(xT, jnp.asarray(Fbig), W4, jnp.asarray(Gbig),
                                     TB=TB, vmem_limit=vmem_limit, single_buffered=False)

    out = jnp.transpose(outT, (1, 0, 2))                                 # (Bp, C_out, N)
    return out[:B] if Bp != B else out


# --------------------------------------------------------------------------- reference

def spectral_conv1d_ref(x, weights_r, weights_i):
    """Pure-JAX reference mirroring the PyTorch forward exactly."""
    B, C_in, N = x.shape
    _, C_out, M = weights_r.shape
    w = weights_r.astype(jnp.complex64) + 1j * weights_i.astype(jnp.complex64)
    x_ft = jnp.fft.rfft(x, axis=-1)                                      # (B, C_in, N//2+1)
    out_ft = jnp.zeros((B, C_out, N // 2 + 1), dtype=jnp.complex64)
    out_ft = out_ft.at[:, :, :M].set(jnp.einsum('bix,iox->box', x_ft[:, :, :M], w))
    return jnp.fft.irfft(out_ft, n=N, axis=-1).astype(jnp.float32)


if __name__ == "__main__":
    B, C_in, C_out, N, modes1 = 2, 4, 4, 16, 8

    key = jax.random.PRNGKey(0)
    kx, kwr, kwi = jax.random.split(key, 3)

    x = jax.random.normal(kx, (B, C_in, N), dtype=jnp.float32)

    # weights1 = scale * rand(in, out, modes1, cfloat)  (uniform [0,1) real & imag parts)
    scale = 1.0 / (C_in * C_out)
    weights_r = scale * jax.random.uniform(kwr, (C_in, C_out, modes1), dtype=jnp.float32)
    weights_i = scale * jax.random.uniform(kwi, (C_in, C_out, modes1), dtype=jnp.float32)

    y = spectral_conv1d(x, weights_r, weights_i)
    y = jax.block_until_ready(y)

    y_ref = jax.block_until_ready(spectral_conv1d_ref(x, weights_r, weights_i))
    assert y.shape == (B, C_out, N)
    assert jnp.allclose(y, y_ref, atol=1e-4, rtol=1e-4), (
        f"max abs err {jnp.max(jnp.abs(y - y_ref))}")

    print("KERNEL_OK")
</pallas_src>

<mosaic_0001>
module attributes {stable_mosaic.version = 11 : i64} {
  func.func @_spectral_conv1d_kernel(%arg0: i32, %arg1: memref<4x8x16xf32, #tpu.memory_space<vmem>>, %arg2: memref<16x32xf32, #tpu.memory_space<vmem>>, %arg3: memref<16x32xf32, #tpu.memory_space<vmem>>, %arg4: memref<32x16xf32, #tpu.memory_space<vmem>>, %arg5: memref<4x8x16xf32, #tpu.memory_space<vmem>>) attributes {dimension_semantics = [#tpu.dimension_semantics<parallel>], iteration_bounds = array<i64: 1>, scalar_prefetch = 0 : i64, scratch_operands = 0 : i64, tpu.core_type = #tpu.core_type<tc>, window_params = [{transform_indices = @transform_0, window_bounds = array<i64: 4, 8, 16>}, {pipeline_mode = #tpu.pipeline_mode<synchronous>, transform_indices = @transform_1, window_bounds = array<i64: 16, 32>}, {pipeline_mode = #tpu.pipeline_mode<synchronous>, transform_indices = @transform_2, window_bounds = array<i64: 16, 32>}, {pipeline_mode = #tpu.pipeline_mode<synchronous>, transform_indices = @transform_3, window_bounds = array<i64: 32, 16>}, {transform_indices = @transform_4, window_bounds = array<i64: 4, 8, 16>}]} {
    %c0 = arith.constant 0 : index
    %c0_0 = arith.constant 0 : index
    %c0_1 = arith.constant 0 : index
    %0 = vector.load %arg1[%c0, %c0_0, %c0_1] : memref<4x8x16xf32, #tpu.memory_space<vmem>>, vector<4x8x16xf32>
    %1 = vector.shape_cast %0 : vector<4x8x16xf32> to vector<32x16xf32>
    %c0_2 = arith.constant 0 : index
    %c0_3 = arith.constant 0 : index
    %2 = vector.load %arg2[%c0_2, %c0_3] : memref<16x32xf32, #tpu.memory_space<vmem>>, vector<16x32xf32>
    %cst = arith.constant dense<0.000000e+00> : vector<32x32xf32>
    %3 = tpu.matmul %1, %2, %cst {dimension_numbers = #tpu.dot_dimension_numbers<[1], [0], [0], [1], [0, 0, 1, 1], [], []>} : vector<32x16xf32>, vector<16x32xf32>, vector<32x32xf32> -> vector<32x32xf32>
    %c0_4 = arith.constant 0 : index
    %c0_5 = arith.constant 0 : index
    %4 = vector.load %arg3[%c0_4, %c0_5] : memref<16x32xf32, #tpu.memory_space<vmem>>, vector<16x32xf32>
    %5 = vector.extract_strided_slice %3 {offsets = [0, 0], sizes = [8, 32], strides = [1, 1]} : vector<32x32xf32> to vector<8x32xf32>
    %6 = vector.extract_strided_slice %3 {offsets = [8, 0], sizes = [8, 32], strides = [1, 1]} : vector<32x32xf32> to vector<8x32xf32>
    %7 = vector.extract_strided_slice %3 {offsets = [16, 0], sizes = [8, 32], strides = [1, 1]} : vector<32x32xf32> to vector<8x32xf32>
    %8 = vector.extract_strided_slice %3 {offsets = [24, 0], sizes = [8, 32], strides = [1, 1]} : vector<32x32xf32> to vector<8x32xf32>
    %9 = vector.extract_strided_slice %4 {offsets = [0, 0], sizes = [1, 32], strides = [1, 1]} : vector<16x32xf32> to vector<1x32xf32>
    %10 = vector.broadcast %9 : vector<1x32xf32> to vector<8x32xf32>
    %11 = arith.mulf %5, %10 : vector<8x32xf32>
    %12 = vector.extract_strided_slice %4 {offsets = [4, 0], sizes = [1, 32], strides = [1, 1]} : vector<16x32xf32> to vector<1x32xf32>
    %13 = vector.broadcast %12 : vector<1x32xf32> to vector<8x32xf32>
    %14 = arith.mulf %6, %13 : vector<8x32xf32>
    %15 = arith.addf %11, %14 : vector<8x32xf32>
    %16 = vector.extract_strided_slice %4 {offsets = [8, 0], sizes = [1, 32], strides = [1, 1]} : vector<16x32xf32> to vector<1x32xf32>
    %17 = vector.broadcast %16 : vector<1x32xf32> to vector<8x32xf32>
    %18 = arith.mulf %7, %17 : vector<8x32xf32>
    %19 = arith.addf %15, %18 : vector<8x32xf32>
    %20 = vector.extract_strided_slice %4 {offsets = [12, 0], sizes = [1, 32], strides = [1, 1]} : vector<16x32xf32> to vector<1x32xf32>
    %21 = vector.broadcast %20 : vector<1x32xf32> to vector<8x32xf32>
    %22 = arith.mulf %8, %21 : vector<8x32xf32>
    %23 = arith.addf %19, %22 : vector<8x32xf32>
    %24 = vector.extract_strided_slice %4 {offsets = [1, 0], sizes = [1, 32], strides = [1, 1]} : vector<16x32xf32> to vector<1x32xf32>
    %25 = vector.broadcast %24 : vector<1x32xf32> to vector<8x32xf32>
    %26 = arith.mulf %5, %25 : vector<8x32xf32>
    %27 = vector.extract_strided_slice %4 {offsets = [5, 0], sizes = [1, 32], strides = [1, 1]} : vector<16x32xf32> to vector<1x32xf32>
    %28 = vector.broadcast %27 : vector<1x32xf32> to vector<8x32xf32>
    %29 = arith.mulf %6, %28 : vector<8x32xf32>
    %30 = arith.addf %26, %29 : vector<8x32xf32>
    %31 = vector.extract_strided_slice %4 {offsets = [9, 0], sizes = [1, 32], strides = [1, 1]} : vector<16x32xf32> to vector<1x32xf32>
    %32 = vector.broadcast %31 : vector<1x32xf32> to vector<8x32xf32>
    %33 = arith.mulf %7, %32 : vector<8x32xf32>
    %34 = arith.addf %30, %33 : vector<8x32xf32>
    %35 = vector.extract_strided_slice %4 {offsets = [13, 0], sizes = [1, 32], strides = [1, 1]} : vector<16x32xf32> to vector<1x32xf32>
    %36 = vector.broadcast %35 : vector<1x32xf32> to vector<8x32xf32>
    %37 = arith.mulf %8, %36 : vector<8x32xf32>
    %38 = arith.addf %34, %37 : vector<8x32xf32>
    %39 = vector.extract_strided_slice %4 {offsets = [2, 0], sizes = [1, 32], strides = [1, 1]} : vector<16x32xf32> to vector<1x32xf32>
    %40 = vector.broadcast %39 : vector<1x32xf32> to vector<8x32xf32>
    %41 = arith.mulf %5, %40 : vector<8x32xf32>
    %42 = vector.extract_strided_slice %4 {offsets = [6, 0], sizes = [1, 32], strides = [1, 1]} : vector<16x32xf32> to vector<1x32xf32>
    %43 = vector.broadcast %42 : vector<1x32xf32> to vector<8x32xf32>
    %44 = arith.mulf %6, %43 : vector<8x32xf32>
    %45 = arith.addf %41, %44 : vector<8x32xf32>
    %46 = vector.extract_strided_slice %4 {offsets = [10, 0], sizes = [1, 32], strides = [1, 1]} : vector<16x32xf32> to vector<1x32xf32>
    %47 = vector.broadcast %46 : vector<1x32xf32> to vector<8x32xf32>
    %48 = arith.mulf %7, %47 : vector<8x32xf32>
    %49 = arith.addf %45, %48 : vector<8x32xf32>
    %50 = vector.extract_strided_slice %4 {offsets = [14, 0], sizes = [1, 32], strides = [1, 1]} : vector<16x32xf32> to vector<1x32xf32>
    %51 = vector.broadcast %50 : vector<1x32xf32> to vector<8x32xf32>
    %52 = arith.mulf %8, %51 : vector<8x32xf32>
    %53 = arith.addf %49, %52 : vector<8x32xf32>
    %54 = vector.extract_strided_slice %4 {offsets = [3, 0], sizes = [1, 32], strides = [1, 1]} : vector<16x32xf32> to vector<1x32xf32>
    %55 = vector.broadcast %54 : vector<1x32xf32> to vector<8x32xf32>
    %56 = arith.mulf %5, %55 : vector<8x32xf32>
    %57 = vector.extract_strided_slice %4 {offsets = [7, 0], sizes = [1, 32], strides = [1, 1]} : vector<16x32xf32> to vector<1x32xf32>
    %58 = vector.broadcast %57 : vector<1x32xf32> to vector<8x32xf32>
    %59 = arith.mulf %6, %58 : vector<8x32xf32>
    %60 = arith.addf %56, %59 : vector<8x32xf32>
    %61 = vector.extract_strided_slice %4 {offsets = [11, 0], sizes = [1, 32], strides = [1, 1]} : vector<16x32xf32> to vector<1x32xf32>
    %62 = vector.broadcast %61 : vector<1x32xf32> to vector<8x32xf32>
    %63 = arith.mulf %7, %62 : vector<8x32xf32>
    %64 = arith.addf %60, %63 : vector<8x32xf32>
    %65 = vector.extract_strided_slice %4 {offsets = [15, 0], sizes = [1, 32], strides = [1, 1]} : vector<16x32xf32> to vector<1x32xf32>
    %66 = vector.broadcast %65 : vector<1x32xf32> to vector<8x32xf32>
    %67 = arith.mulf %8, %66 : vector<8x32xf32>
    %68 = arith.addf %64, %67 : vector<8x32xf32>
    %69 = tpu.concatenate %23, %38, %53, %68 in 0 : vector<8x32xf32>, vector<8x32xf32>, vector<8x32xf32>, vector<8x32xf32> -> vector<32x32xf32>
    %c0_6 = arith.constant 0 : index
    %c0_7 = arith.constant 0 : index
    %70 = vector.load %arg4[%c0_6, %c0_7] : memref<32x16xf32, #tpu.memory_space<vmem>>, vector<32x16xf32>
    %cst_8 = arith.constant dense<0.000000e+00> : vector<32x16xf32>
    %71 = tpu.matmul %69, %70, %cst_8 {dimension_numbers = #tpu.dot_dimension_numbers<[1], [0], [0], [1], [0, 0, 1, 1], [], []>} : vector<32x32xf32>, vector<32x16xf32>, vector<32x16xf32> -> vector<32x16xf32>
    %72 = vector.shape_cast %71 : vector<32x16xf32> to vector<4x8x16xf32>
    %c0_9 = arith.constant 0 : index
    %c0_10 = arith.constant 0 : index
    %c0_11 = arith.constant 0 : index
    %73 = vector.load %arg5[%c0_9, %c0_10, %c0_11] : memref<4x8x16xf32, #tpu.memory_space<vmem>>, vector<4x8x16xf32>
    tpu.vector_store %arg5[%c0_9, %c0_10, %c0_11], %72 {strides = array<i32>} : memref<4x8x16xf32, #tpu.memory_space<vmem>>, vector<4x8x16xf32>,
    return
  }
  func.func @transform_0(%arg0: i32) -> (i32, i32, i32) {
    %c0_i32 = arith.constant 0 : i32
    %c0_i32_0 = arith.constant 0 : i32
    %c0_i32_1 = arith.constant 0 : i32
    return %c0_i32, %arg0, %c0_i32_0 : i32, i32, i32
  }
  func.func @transform_1(%arg0: i32) -> (i32, i32) {
    %c0_i32 = arith.constant 0 : i32
    %c0_i32_0 = arith.constant 0 : i32
    %c0_i32_1 = arith.constant 0 : i32
    return %c0_i32, %c0_i32_0 : i32, i32
  }
  func.func @transform_2(%arg0: i32) -> (i32, i32) {
    %c0_i32 = arith.constant 0 : i32
    %c0_i32_0 = arith.constant 0 : i32
    %c0_i32_1 = arith.constant 0 : i32
    return %c0_i32, %c0_i32_0 : i32, i32
  }
  func.func @transform_3(%arg0: i32) -> (i32, i32) {
    %c0_i32 = arith.constant 0 : i32
    %c0_i32_0 = arith.constant 0 : i32
    %c0_i32_1 = arith.constant 0 : i32
    return %c0_i32, %c0_i32_0 : i32, i32
  }
  func.func @transform_4(%arg0: i32) -> (i32, i32, i32) {
    %c0_i32 = arith.constant 0 : i32
    %c0_i32_0 = arith.constant 0 : i32
    %c0_i32_1 = arith.constant 0 : i32
    return %c0_i32, %arg0, %c0_i32_0 : i32, i32, i32
  }
}

module attributes {stable_mosaic.version = 11 : i64} {
  func.func @_spectral_conv1d_kernel(%arg0: i32, %arg1: memref<4x8x16xf32, #tpu.memory_space<vmem>>, %arg2: memref<16x32xf32, #tpu.memory_space<vmem>>, %arg3: memref<16x32xf32, #tpu.memory_space<vmem>>, %arg4: memref<32x16xf32, #tpu.memory_space<vmem>>, %arg5: memref<4x8x16xf32, #tpu.memory_space<vmem>>) attributes {dimension_semantics = [#tpu.dimension_semantics<parallel>], iteration_bounds = array<i64: 1>, scalar_prefetch = 0 : i64, scratch_operands = 0 : i64, tpu.core_type = #tpu.core_type<tc>, window_params = [{transform_indices = @transform_0, window_bounds = array<i64: 4, 8, 16>}, {pipeline_mode = #tpu.pipeline_mode<synchronous>, transform_indices = @transform_1, window_bounds = array<i64: 16, 32>}, {pipeline_mode = #tpu.pipeline_mode<synchronous>, transform_indices = @transform_2, window_bounds = array<i64: 16, 32>}, {pipeline_mode = #tpu.pipeline_mode<synchronous>, transform_indices = @transform_3, window_bounds = array<i64: 32, 16>}, {transform_indices = @transform_4, window_bounds = array<i64: 4, 8, 16>}]} {
    %c0 = arith.constant 0 : index
    %c0_0 = arith.constant 0 : index
    %c0_1 = arith.constant 0 : index
    %0 = vector.load %arg1[%c0, %c0_0, %c0_1] : memref<4x8x16xf32, #tpu.memory_space<vmem>>, vector<4x8x16xf32>
    %1 = vector.shape_cast %0 : vector<4x8x16xf32> to vector<32x16xf32>
    %c0_2 = arith.constant 0 : index
    %c0_3 = arith.constant 0 : index
    %2 = vector.load %arg2[%c0_2, %c0_3] : memref<16x32xf32, #tpu.memory_space<vmem>>, vector<16x32xf32>
    %cst = arith.constant dense<0.000000e+00> : vector<32x32xf32>
    %3 = tpu.matmul %1, %2, %cst {dimension_numbers = #tpu.dot_dimension_numbers<[1], [0], [0], [1], [0, 0, 1, 1], [], []>} : vector<32x16xf32>, vector<16x32xf32>, vector<32x32xf32> -> vector<32x32xf32>
    %c0_4 = arith.constant 0 : index
    %c0_5 = arith.constant 0 : index
    %4 = vector.load %arg3[%c0_4, %c0_5] : memref<16x32xf32, #tpu.memory_space<vmem>>, vector<16x32xf32>
    %5 = vector.extract_strided_slice %3 {offsets = [0, 0], sizes = [8, 32], strides = [1, 1]} : vector<32x32xf32> to vector<8x32xf32>
    %6 = vector.extract_strided_slice %3 {offsets = [8, 0], sizes = [8, 32], strides = [1, 1]} : vector<32x32xf32> to vector<8x32xf32>
    %7 = vector.extract_strided_slice %3 {offsets = [16, 0], sizes = [8, 32], strides = [1, 1]} : vector<32x32xf32> to vector<8x32xf32>
    %8 = vector.extract_strided_slice %3 {offsets = [24, 0], sizes = [8, 32], strides = [1, 1]} : vector<32x32xf32> to vector<8x32xf32>
    %9 = vector.extract_strided_slice %4 {offsets = [0, 0], sizes = [1, 32], strides = [1, 1]} : vector<16x32xf32> to vector<1x32xf32>
    %10 = vector.broadcast %9 : vector<1x32xf32> to vector<8x32xf32>
    %11 = arith.mulf %5, %10 : vector<8x32xf32>
    %12 = vector.extract_strided_slice %4 {offsets = [4, 0], sizes = [1, 32], strides = [1, 1]} : vector<16x32xf32> to vector<1x32xf32>
    %13 = vector.broadcast %12 : vector<1x32xf32> to vector<8x32xf32>
    %14 = arith.mulf %6, %13 : vector<8x32xf32>
    %15 = arith.addf %11, %14 : vector<8x32xf32>
    %16 = vector.extract_strided_slice %4 {offsets = [8, 0], sizes = [1, 32], strides = [1, 1]} : vector<16x32xf32> to vector<1x32xf32>
    %17 = vector.broadcast %16 : vector<1x32xf32> to vector<8x32xf32>
    %18 = arith.mulf %7, %17 : vector<8x32xf32>
    %19 = arith.addf %15, %18 : vector<8x32xf32>
    %20 = vector.extract_strided_slice %4 {offsets = [12, 0], sizes = [1, 32], strides = [1, 1]} : vector<16x32xf32> to vector<1x32xf32>
    %21 = vector.broadcast %20 : vector<1x32xf32> to vector<8x32xf32>
    %22 = arith.mulf %8, %21 : vector<8x32xf32>
    %23 = arith.addf %19, %22 : vector<8x32xf32>
    %24 = vector.extract_strided_slice %4 {offsets = [1, 0], sizes = [1, 32], strides = [1, 1]} : vector<16x32xf32> to vector<1x32xf32>
    %25 = vector.broadcast %24 : vector<1x32xf32> to vector<8x32xf32>
    %26 = arith.mulf %5, %25 : vector<8x32xf32>
    %27 = vector.extract_strided_slice %4 {offsets = [5, 0], sizes = [1, 32], strides = [1, 1]} : vector<16x32xf32> to vector<1x32xf32>
    %28 = vector.broadcast %27 : vector<1x32xf32> to vector<8x32xf32>
    %29 = arith.mulf %6, %28 : vector<8x32xf32>
    %30 = arith.addf %26, %29 : vector<8x32xf32>
    %31 = vector.extract_strided_slice %4 {offsets = [9, 0], sizes = [1, 32], strides = [1, 1]} : vector<16x32xf32> to vector<1x32xf32>
    %32 = vector.broadcast %31 : vector<1x32xf32> to vector<8x32xf32>
    %33 = arith.mulf %7, %32 : vector<8x32xf32>
    %34 = arith.addf %30, %33 : vector<8x32xf32>
    %35 = vector.extract_strided_slice %4 {offsets = [13, 0], sizes = [1, 32], strides = [1, 1]} : vector<16x32xf32> to vector<1x32xf32>
    %36 = vector.broadcast %35 : vector<1x32xf32> to vector<8x32xf32>
    %37 = arith.mulf %8, %36 : vector<8x32xf32>
    %38 = arith.addf %34, %37 : vector<8x32xf32>
    %39 = vector.extract_strided_slice %4 {offsets = [2, 0], sizes = [1, 32], strides = [1, 1]} : vector<16x32xf32> to vector<1x32xf32>
    %40 = vector.broadcast %39 : vector<1x32xf32> to vector<8x32xf32>
    %41 = arith.mulf %5, %40 : vector<8x32xf32>
    %42 = vector.extract_strided_slice %4 {offsets = [6, 0], sizes = [1, 32], strides = [1, 1]} : vector<16x32xf32> to vector<1x32xf32>
    %43 = vector.broadcast %42 : vector<1x32xf32> to vector<8x32xf32>
    %44 = arith.mulf %6, %43 : vector<8x32xf32>
    %45 = arith.addf %41, %44 : vector<8x32xf32>
    %46 = vector.extract_strided_slice %4 {offsets = [10, 0], sizes = [1, 32], strides = [1, 1]} : vector<16x32xf32> to vector<1x32xf32>
    %47 = vector.broadcast %46 : vector<1x32xf32> to vector<8x32xf32>
    %48 = arith.mulf %7, %47 : vector<8x32xf32>
    %49 = arith.addf %45, %48 : vector<8x32xf32>
    %50 = vector.extract_strided_slice %4 {offsets = [14, 0], sizes = [1, 32], strides = [1, 1]} : vector<16x32xf32> to vector<1x32xf32>
    %51 = vector.broadcast %50 : vector<1x32xf32> to vector<8x32xf32>
    %52 = arith.mulf %8, %51 : vector<8x32xf32>
    %53 = arith.addf %49, %52 : vector<8x32xf32>
    %54 = vector.extract_strided_slice %4 {offsets = [3, 0], sizes = [1, 32], strides = [1, 1]} : vector<16x32xf32> to vector<1x32xf32>
    %55 = vector.broadcast %54 : vector<1x32xf32> to vector<8x32xf32>
    %56 = arith.mulf %5, %55 : vector<8x32xf32>
    %57 = vector.extract_strided_slice %4 {offsets = [7, 0], sizes = [1, 32], strides = [1, 1]} : vector<16x32xf32> to vector<1x32xf32>
    %58 = vector.broadcast %57 : vector<1x32xf32> to vector<8x32xf32>
    %59 = arith.mulf %6, %58 : vector<8x32xf32>
    %60 = arith.addf %56, %59 : vector<8x32xf32>
    %61 = vector.extract_strided_slice %4 {offsets = [11, 0], sizes = [1, 32], strides = [1, 1]} : vector<16x32xf32> to vector<1x32xf32>
    %62 = vector.broadcast %61 : vector<1x32xf32> to vector<8x32xf32>
    %63 = arith.mulf %7, %62 : vector<8x32xf32>
    %64 = arith.addf %60, %63 : vector<8x32xf32>
    %65 = vector.extract_strided_slice %4 {offsets = [15, 0], sizes = [1, 32], strides = [1, 1]} : vector<16x32xf32> to vector<1x32xf32>
    %66 = vector.broadcast %65 : vector<1x32xf32> to vector<8x32xf32>
    %67 = arith.mulf %8, %66 : vector<8x32xf32>
    %68 = arith.addf %64, %67 : vector<8x32xf32>
    %69 = tpu.concatenate %23, %38, %53, %68 in 0 : vector<8x32xf32>, vector<8x32xf32>, vector<8x32xf32>, vector<8x32xf32> -> vector<32x32xf32>
    %c0_6 = arith.constant 0 : index
    %c0_7 = arith.constant 0 : index
    %70 = vector.load %arg4[%c0_6, %c0_7] : memref<32x16xf32, #tpu.memory_space<vmem>>, vector<32x16xf32>
    %cst_8 = arith.constant dense<0.000000e+00> : vector<32x16xf32>
    %71 = tpu.matmul %69, %70, %cst_8 {dimension_numbers = #tpu.dot_dimension_numbers<[1], [0], [0], [1], [0, 0, 1, 1], [], []>} : vector<32x32xf32>, vector<32x16xf32>, vector<32x16xf32> -> vector<32x16xf32>
    %72 = vector.shape_cast %71 : vector<32x16xf32> to vector<4x8x16xf32>
    %c0_9 = arith.constant 0 : index
    %c0_10 = arith.constant 0 : index
    %c0_11 = arith.constant 0 : index
    %73 = vector.load %arg5[%c0_9, %c0_10, %c0_11] : memref<4x8x16xf32, #tpu.memory_space<vmem>>, vector<4x8x16xf32>
    tpu.vector_store %arg5[%c0_9, %c0_10, %c0_11], %72 {strides = array<i32>} : memref<4x8x16xf32, #tpu.memory_space<vmem>>, vector<4x8x16xf32>,
    return
  }
  func.func @transform_0(%arg0: i32) -> (i32, i32, i32) {
    %c0_i32 = arith.constant 0 : i32
    %c0_i32_0 = arith.constant 0 : i32
    %c0_i32_1 = arith.constant 0 : i32
    return %c0_i32, %arg0, %c0_i32_0 : i32, i32, i32
  }
  func.func @transform_1(%arg0: i32) -> (i32, i32) {
    %c0_i32 = arith.constant 0 : i32
    %c0_i32_0 = arith.constant 0 : i32
    %c0_i32_1 = arith.constant 0 : i32
    return %c0_i32, %c0_i32_0 : i32, i32
  }
  func.func @transform_2(%arg0: i32) -> (i32, i32) {
    %c0_i32 = arith.constant 0 : i32
    %c0_i32_0 = arith.constant 0 : i32
    %c0_i32_1 = arith.constant 0 : i32
    return %c0_i32, %c0_i32_0 : i32, i32
  }
  func.func @transform_3(%arg0: i32) -> (i32, i32) {
    %c0_i32 = arith.constant 0 : i32
    %c0_i32_0 = arith.constant 0 : i32
    %c0_i32_1 = arith.constant 0 : i32
    return %c0_i32, %c0_i32_0 : i32, i32
  }
  func.func @transform_4(%arg0: i32) -> (i32, i32, i32) {
    %c0_i32 = arith.constant 0 : i32
    %c0_i32_0 = arith.constant 0 : i32
    %c0_i32_1 = arith.constant 0 : i32
    return %c0_i32, %arg0, %c0_i32_0 : i32, i32, i32
  }
}

</mosaic_0001>

<bundles_post_ra>
// kernel: tpu_custom_call.1
= control target key start
LH: loop header
LB: loop body
LE: loop exit
PB: predicated region body
PF: predicated region fallthrough
CT: control target
= control target key end

     0   :  { %9 = vsyncpa [#allocation3], 0  ;;  %s350_s0 = inlined_call_operand.vmem [shape: f32[4,8,16], index: 0, kind: input, shape index: {}]   ;;  %s351_s1 = inlined_call_operand.vmem [shape: f32[16,32], index: 1, kind: input, shape index: {}]   ;;  %s352_s2 = inlined_call_operand.hbm [shape: f32[16,32], index: 2, kind: input, shape index: {}]   ;;  %s353_s3 = inlined_call_operand.vmem [shape: f32[32,16], index: 3, kind: input, shape index: {}]   ;;  %s354_s4 = inlined_call_operand.hbm [shape: f32[4,8,16], index: 4, kind: output, shape index: {}]  }
   0x1   :  { %10 = vsyncpa [#allocation4], 0  ;;  %s19_s17 = sshll.u32 %s352_s2, 4  ;;  %s267_s18 = smov [#allocation2]   ;;  %s20_s17 = int_to_ptr.hbm [resolvable:$true] %s19_s17 }
   0x2   :  { %s21_s19 = sshll.u32 %s267_s18, 4  ;;  %s268_s20 = smov 128   ;;  %s22_s19 = int_to_ptr.vmem [resolvable:$true] %s21_s19 }
   0x3   :  { %s269_s21 = smov 8  }
   0x4   :  { %27 = dma.hbm_to_vmem [thread:$0]  %s20_s17, 256, %s22_s19, [#allocation3], %s268_s20, %s268_s20, %s269_s21  }
   0x5   :  { %263 = dma.done.wait [#allocation3], 256  }
   0x6   :  { %264 = vsyncadd [#allocation3], 4294967040  ;;  %v39_v0 = vld [vmem:[%s351_s1 + $0x8] sm:$0xff]  ;;  %v38_v1 = vld [vmem:[%s351_s1] sm:$0xff]  ;;  %vm40_vm0 = vcmask 130048   ;;  %vm132_vm1 = vcmask 261120  }
   0x7   :  { %205 = vmatpush.msra.mxu3 %v39_v0  ;;  %v35_v2 = vld [vmem:[%s350_s0 + $0x8] sm:$0xff]  ;;  %67 = vmatpush.msra.mxu0 %v39_v0  ;;  %v34_v3 = vld [vmem:[%s350_s0] sm:$0xff]  ;;  %v36_v4 = vld [vmem:[%s350_s0 + $0x10] sm:$0xff]  ;;  %s184_s16 = sshll.u32 %s354_s4, 4  ;;  %s185_s16 = int_to_ptr.hbm [resolvable:$true] %s184_s16 }
   0x8   :  { %v37_v5 = vld [vmem:[%s350_s0 + $0x18] sm:$0xff]  ;;  %v130_v7 = vld [vmem:[%s353_s3 + $0x10] sm:$0xff]  ;;  %v129_v8 = vld [vmem:[%s353_s3 + $0x8] sm:$0xff] }
   0x9   :  { %206 = vmatpush.msra.mxu3 %v38_v1  ;;  %68 = vmatpush.msra.mxu0 %v38_v1  ;;  %v131_v6 = vld [vmem:[%s353_s3 + $0x18] sm:$0xff]  ;;  %v128_v9 = vld [vmem:[%s353_s3] sm:$0xff]  ;;  %v83_v12 = vld [vmem:[#allocation2 + $0x8] sm:$0xff]  ;;  %s270_s3 = smov [#allocation5]  }
   0xa   :  { %198 = vmatmul.msk.f32.vlgmr.msra.gmra.mxu3 %vm40_vm0, %v35_v2  ;;  %197 = vmatmul.msk.f32.vlgmr.msra.gmra.mxu0 %vm40_vm0, %v34_v3  ;;  %v82_v11 = vld [vmem:[#allocation2] sm:$0xff]  ;;  %v89_v19 = vperm.slane %v83_v12, 0  ;;  %v111_v20 = vperm.slane %v83_v12, 2  ;;  %v92_v27 = vperm.slane %v83_v12, 4  ;;  %v114_v28 = vperm.slane %v83_v12, 6  ;;  %s182_s13 = sshll.u32 %s270_s3, 4  ;;  %s183_s13 = int_to_ptr.vmem [resolvable:$true] %s182_s13 }
   0xb   :  { %157 = vmatpush.msra.mxu1 %v131_v6  ;;  %207 = vmatpush.msra.mxu2 %v131_v6  ;;  %v84_v13 = vperm.slane %v82_v11, 0  ;;  %v106_v14 = vperm.slane %v82_v11, 2  ;;  %v86_v15 = vperm.slane %v82_v11, 4  ;;  %v108_v16 = vperm.slane %v82_v11, 6 }
   0xc   :  { %v95_v29 = vperm.slane %v82_v11, 1  ;;  %v117_v30 = vperm.slane %v82_v11, 3  ;;  %v97_v32 = vperm.slane %v82_v11, 5  ;;  %v119_v34 = vperm.slane %v82_v11, 7 }
   0xd   :  { %158 = vmatpush.msra.mxu1 %v130_v7  ;;  %208 = vmatpush.msra.mxu2 %v130_v7  ;;  %v100_v35 = vperm.slane %v83_v12, 1  ;;  %v122_v36 = vperm.slane %v83_v12, 3  ;;  %v103_v38 = vperm.slane %v83_v12, 5  ;;  %v125_v45 = vperm.slane %v83_v12, 7 }
   0xf   :  { %159 = vmatpush.msra.mxu1 %v129_v8  ;;  %209 = vmatpush.msra.mxu2 %v129_v8 }
  0x11   :  { %160 = vmatpush.msra.mxu1 %v128_v9  ;;  %210 = vmatpush.msra.mxu2 %v128_v9 }
  0x12   :  { %199 = vmatmul.msk.f32.gmra.mxu3 %vm40_vm0, %v36_v4 }
  0x1a   :  { %200 = vmatmul.msk.f32.gmra.mxu3 %vm40_vm0, %v37_v5 }
  0x87   :  { %v70_v17 = vpop.f32.mrf.mxu0 }
  0x88   :  { %v85_v21 = vmul.f32 %v84_v13, %v70_v17  ;;  %v107_v22 = vmul.f32 %v106_v14, %v70_v17  ;;  %v96_v43 = vmul.f32 %v95_v29, %v70_v17  ;;  %v118_v44 = vmul.f32 %v117_v30, %v70_v17 }
  0x8d   :  { %v73_v10 = vpop.f32.mrf.mxu3 }
  0x8e   :  { %v87_v23 = vmul.f32 %v86_v15, %v73_v10  ;;  %v109_v24 = vmul.f32 %v108_v16, %v73_v10  ;;  %v98_v46 = vmul.f32 %v97_v32, %v73_v10  ;;  %v120_v47 = vmul.f32 %v119_v34, %v73_v10 }
  0x90   :  { %v88_v31 = vadd.f32 %v87_v23, %v85_v21  ;;  %v110_v33 = vadd.f32 %v109_v24, %v107_v22  ;;  %v99_v52 = vadd.f32 %v98_v46, %v96_v43  ;;  %v121_v53 = vadd.f32 %v120_v47, %v118_v44 }
  0x95   :  { %v76_v18 = vpop.f32.mrf.mxu3 }
  0x96   :  { %v90_v25 = vmul.f32 %v89_v19, %v76_v18  ;;  %v112_v26 = vmul.f32 %v111_v20, %v76_v18  ;;  %v101_v50 = vmul.f32 %v100_v35, %v76_v18  ;;  %v123_v51 = vmul.f32 %v122_v36, %v76_v18 }
  0x98   :  { %v91_v41 = vadd.f32 %v90_v25, %v88_v31  ;;  %v113_v42 = vadd.f32 %v112_v26, %v110_v33  ;;  %v102_v56 = vadd.f32 %v101_v50, %v99_v52  ;;  %v124_v57 = vadd.f32 %v123_v51, %v121_v53 }
  0x9d   :  { %v79_v37 = vpop.f32.mrf.mxu3 }
  0x9e   :  { %v93_v39 = vmul.f32 %v92_v27, %v79_v37  ;;  %v115_v40 = vmul.f32 %v114_v28, %v79_v37  ;;  %v104_v54 = vmul.f32 %v103_v38, %v79_v37  ;;  %v126_v55 = vmul.f32 %v125_v45, %v79_v37 }
  0xa0   :  { %v94_v48 = vadd.f32 %v93_v39, %v91_v41  ;;  %v116_v49 = vadd.f32 %v115_v40, %v113_v42  ;;  %v105_v58 = vadd.f32 %v104_v54, %v102_v56  ;;  %v127_v59 = vadd.f32 %v126_v55, %v124_v57 }
  0xa2   :  { %201 = vmatmul.msk.f32.vlgmr.msra.gmra.mxu1 %vm132_vm1, %v94_v48  ;;  %203 = vmatmul.msk.f32.vlgmr.msra.gmra.mxu2 %vm132_vm1, %v116_v49 }
  0xaa   :  { %202 = vmatmul.msk.f32.gmra.mxu1 %vm132_vm1, %v105_v58  ;;  %204 = vmatmul.msk.f32.gmra.mxu2 %vm132_vm1, %v127_v59 }
 0x11f   :  { %v162_v60 = vpop.f32.mrf.mxu1 }
 0x120   :  { %174 = vst.msk [vmem:[#allocation5] sm:$0xff] %vm40_vm0, %v162_v60 }
 0x125   :  { %v168_v61 = vpop.f32.mrf.mxu2 }
 0x126   :  { %176 = vst.msk [vmem:[#allocation5 + $0x10] sm:$0xff] %vm40_vm0, %v168_v61 }
 0x127   :  { %v165_v62 = vpop.f32.mrf.mxu1 }
 0x128   :  { %175 = vst.msk [vmem:[#allocation5 + $0x8] sm:$0xff] %vm40_vm0, %v165_v62 }
 0x12d   :  { %v171_v63 = vpop.f32.mrf.mxu2 }
 0x12e   :  { %177 = vst.msk [vmem:[#allocation5 + $0x18] sm:$0xff] %vm40_vm0, %v171_v63 }
 0x12f   :  { %190 = dma.vmem_to_hbm [thread:$0]  %s183_s13, 512, %s185_s16, [#allocation4], %s268_s20, %s268_s20, %s269_s21  }
 0x130   :  { %265 = dma.done.wait [#allocation4], 512  }
 0x131   :  { %266 = vsyncadd [#allocation4], 4294966784 }
 0x132   :  { %195 = vsyncpa [#allocation3], 1 }
 0x133   :  { %196 = vsyncpa [#allocation4], 1 }

// kernel: tpu_custom_call.1
= control target key start
LH: loop header
LB: loop body
LE: loop exit
PB: predicated region body
PF: predicated region fallthrough
CT: control target
= control target key end

     0   :  { %9 = vsyncpa [#allocation3], 0  ;;  %s350_s0 = inlined_call_operand.vmem [shape: f32[4,8,16], index: 0, kind: input, shape index: {}]   ;;  %s351_s1 = inlined_call_operand.vmem [shape: f32[16,32], index: 1, kind: input, shape index: {}]   ;;  %s352_s2 = inlined_call_operand.hbm [shape: f32[16,32], index: 2, kind: input, shape index: {}]   ;;  %s353_s3 = inlined_call_operand.vmem [shape: f32[32,16], index: 3, kind: input, shape index: {}]   ;;  %s354_s4 = inlined_call_operand.hbm [shape: f32[4,8,16], index: 4, kind: output, shape index: {}]  }
   0x1   :  { %10 = vsyncpa [#allocation4], 0  ;;  %s19_s17 = sshll.u32 %s352_s2, 4  ;;  %s267_s18 = smov [#allocation2]   ;;  %s20_s17 = int_to_ptr.hbm [resolvable:$true] %s19_s17 }
   0x2   :  { %s21_s19 = sshll.u32 %s267_s18, 4  ;;  %s268_s20 = smov 128   ;;  %s22_s19 = int_to_ptr.vmem [resolvable:$true] %s21_s19 }
   0x3   :  { %s269_s21 = smov 8  }
   0x4   :  { %27 = dma.hbm_to_vmem [thread:$0]  %s20_s17, 256, %s22_s19, [#allocation3], %s268_s20, %s268_s20, %s269_s21  }
   0x5   :  { %263 = dma.done.wait [#allocation3], 256  }
   0x6   :  { %264 = vsyncadd [#allocation3], 4294967040  ;;  %v39_v0 = vld [vmem:[%s351_s1 + $0x8] sm:$0xff]  ;;  %v38_v1 = vld [vmem:[%s351_s1] sm:$0xff]  ;;  %vm40_vm0 = vcmask 130048   ;;  %vm132_vm1 = vcmask 261120  }
   0x7   :  { %205 = vmatpush.msra.mxu3 %v39_v0  ;;  %v35_v2 = vld [vmem:[%s350_s0 + $0x8] sm:$0xff]  ;;  %67 = vmatpush.msra.mxu0 %v39_v0  ;;  %v34_v3 = vld [vmem:[%s350_s0] sm:$0xff]  ;;  %v36_v4 = vld [vmem:[%s350_s0 + $0x10] sm:$0xff]  ;;  %s184_s16 = sshll.u32 %s354_s4, 4  ;;  %s185_s16 = int_to_ptr.hbm [resolvable:$true] %s184_s16 }
   0x8   :  { %v37_v5 = vld [vmem:[%s350_s0 + $0x18] sm:$0xff]  ;;  %v130_v7 = vld [vmem:[%s353_s3 + $0x10] sm:$0xff]  ;;  %v129_v8 = vld [vmem:[%s353_s3 + $0x8] sm:$0xff] }
   0x9   :  { %206 = vmatpush.msra.mxu3 %v38_v1  ;;  %68 = vmatpush.msra.mxu0 %v38_v1  ;;  %v131_v6 = vld [vmem:[%s353_s3 + $0x18] sm:$0xff]  ;;  %v128_v9 = vld [vmem:[%s353_s3] sm:$0xff]  ;;  %v83_v12 = vld [vmem:[#allocation2 + $0x8] sm:$0xff]  ;;  %s270_s3 = smov [#allocation5]  }
   0xa   :  { %198 = vmatmul.msk.f32.vlgmr.msra.gmra.mxu3 %vm40_vm0, %v35_v2  ;;  %197 = vmatmul.msk.f32.vlgmr.msra.gmra.mxu0 %vm40_vm0, %v34_v3  ;;  %v82_v11 = vld [vmem:[#allocation2] sm:$0xff]  ;;  %v89_v19 = vperm.slane %v83_v12, 0  ;;  %v111_v20 = vperm.slane %v83_v12, 2  ;;  %v92_v27 = vperm.slane %v83_v12, 4  ;;  %v114_v28 = vperm.slane %v83_v12, 6  ;;  %s182_s13 = sshll.u32 %s270_s3, 4  ;;  %s183_s13 = int_to_ptr.vmem [resolvable:$true] %s182_s13 }
   0xb   :  { %157 = vmatpush.msra.mxu1 %v131_v6  ;;  %207 = vmatpush.msra.mxu2 %v131_v6  ;;  %v84_v13 = vperm.slane %v82_v11, 0  ;;  %v106_v14 = vperm.slane %v82_v11, 2  ;;  %v86_v15 = vperm.slane %v82_v11, 4  ;;  %v108_v16 = vperm.slane %v82_v11, 6 }
   0xc   :  { %v95_v29 = vperm.slane %v82_v11, 1  ;;  %v117_v30 = vperm.slane %v82_v11, 3  ;;  %v97_v32 = vperm.slane %v82_v11, 5  ;;  %v119_v34 = vperm.slane %v82_v11, 7 }
   0xd   :  { %158 = vmatpush.msra.mxu1 %v130_v7  ;;  %208 = vmatpush.msra.mxu2 %v130_v7  ;;  %v100_v35 = vperm.slane %v83_v12, 1  ;;  %v122_v36 = vperm.slane %v83_v12, 3  ;;  %v103_v38 = vperm.slane %v83_v12, 5  ;;  %v125_v45 = vperm.slane %v83_v12, 7 }
   0xf   :  { %159 = vmatpush.msra.mxu1 %v129_v8  ;;  %209 = vmatpush.msra.mxu2 %v129_v8 }
  0x11   :  { %160 = vmatpush.msra.mxu1 %v128_v9  ;;  %210 = vmatpush.msra.mxu2 %v128_v9 }
  0x12   :  { %199 = vmatmul.msk.f32.gmra.mxu3 %vm40_vm0, %v36_v4 }
  0x1a   :  { %200 = vmatmul.msk.f32.gmra.mxu3 %vm40_vm0, %v37_v5 }
  0x87   :  { %v70_v17 = vpop.f32.mrf.mxu0 }
  0x88   :  { %v85_v21 = vmul.f32 %v84_v13, %v70_v17  ;;  %v107_v22 = vmul.f32 %v106_v14, %v70_v17  ;;  %v96_v43 = vmul.f32 %v95_v29, %v70_v17  ;;  %v118_v44 = vmul.f32 %v117_v30, %v70_v17 }
  0x8d   :  { %v73_v10 = vpop.f32.mrf.mxu3 }
  0x8e   :  { %v87_v23 = vmul.f32 %v86_v15, %v73_v10  ;;  %v109_v24 = vmul.f32 %v108_v16, %v73_v10  ;;  %v98_v46 = vmul.f32 %v97_v32, %v73_v10  ;;  %v120_v47 = vmul.f32 %v119_v34, %v73_v10 }
  0x90   :  { %v88_v31 = vadd.f32 %v87_v23, %v85_v21  ;;  %v110_v33 = vadd.f32 %v109_v24, %v107_v22  ;;  %v99_v52 = vadd.f32 %v98_v46, %v96_v43  ;;  %v121_v53 = vadd.f32 %v120_v47, %v118_v44 }
  0x95   :  { %v76_v18 = vpop.f32.mrf.mxu3 }
  0x96   :  { %v90_v25 = vmul.f32 %v89_v19, %v76_v18  ;;  %v112_v26 = vmul.f32 %v111_v20, %v76_v18  ;;  %v101_v50 = vmul.f32 %v100_v35, %v76_v18  ;;  %v123_v51 = vmul.f32 %v122_v36, %v76_v18 }
  0x98   :  { %v91_v41 = vadd.f32 %v90_v25, %v88_v31  ;;  %v113_v42 = vadd.f32 %v112_v26, %v110_v33  ;;  %v102_v56 = vadd.f32 %v101_v50, %v99_v52  ;;  %v124_v57 = vadd.f32 %v123_v51, %v121_v53 }
  0x9d   :  { %v79_v37 = vpop.f32.mrf.mxu3 }
  0x9e   :  { %v93_v39 = vmul.f32 %v92_v27, %v79_v37  ;;  %v115_v40 = vmul.f32 %v114_v28, %v79_v37  ;;  %v104_v54 = vmul.f32 %v103_v38, %v79_v37  ;;  %v126_v55 = vmul.f32 %v125_v45, %v79_v37 }
  0xa0   :  { %v94_v48 = vadd.f32 %v93_v39, %v91_v41  ;;  %v116_v49 = vadd.f32 %v115_v40, %v113_v42  ;;  %v105_v58 = vadd.f32 %v104_v54, %v102_v56  ;;  %v127_v59 = vadd.f32 %v126_v55, %v124_v57 }
  0xa2   :  { %201 = vmatmul.msk.f32.vlgmr.msra.gmra.mxu1 %vm132_vm1, %v94_v48  ;;  %203 = vmatmul.msk.f32.vlgmr.msra.gmra.mxu2 %vm132_vm1, %v116_v49 }
  0xaa   :  { %202 = vmatmul.msk.f32.gmra.mxu1 %vm132_vm1, %v105_v58  ;;  %204 = vmatmul.msk.f32.gmra.mxu2 %vm132_vm1, %v127_v59 }
 0x11f   :  { %v162_v60 = vpop.f32.mrf.mxu1 }
 0x120   :  { %174 = vst.msk [vmem:[#allocation5] sm:$0xff] %vm40_vm0, %v162_v60 }
 0x125   :  { %v168_v61 = vpop.f32.mrf.mxu2 }
 0x126   :  { %176 = vst.msk [vmem:[#allocation5 + $0x10] sm:$0xff] %vm40_vm0, %v168_v61 }
 0x127   :  { %v165_v62 = vpop.f32.mrf.mxu1 }
 0x128   :  { %175 = vst.msk [vmem:[#allocation5 + $0x8] sm:$0xff] %vm40_vm0, %v165_v62 }
 0x12d   :  { %v171_v63 = vpop.f32.mrf.mxu2 }
 0x12e   :  { %177 = vst.msk [vmem:[#allocation5 + $0x18] sm:$0xff] %vm40_vm0, %v171_v63 }
 0x12f   :  { %190 = dma.vmem_to_hbm [thread:$0]  %s183_s13, 512, %s185_s16, [#allocation4], %s268_s20, %s268_s20, %s269_s21  }
 0x130   :  { %265 = dma.done.wait [#allocation4], 512  }
 0x131   :  { %266 = vsyncadd [#allocation4], 4294966784 }
 0x132   :  { %195 = vsyncpa [#allocation3], 1 }
 0x133   :  { %196 = vsyncpa [#allocation4], 1 }

</bundles_post_ra>
